<compile_context>
chip_gen: v7x
topology: tpu7x:2x2x1
jax: 0.10.0
libtpu: 0.0.40
codegen_flags: <defaults>
</compile_context>

<pallas_src>
import jax
import jax.numpy as jnp
from jax.experimental import pallas as pl
from jax.experimental.pallas import tpu as pltpu


# ----------------------------------------------------------------------------
# Shared in-register step (input projection already applied).
# ----------------------------------------------------------------------------
def _onlstm_step_from_xw(xw, h_prev, c_prev, wh, m_fi, H, L):
    """One ON-LSTM update given xw = x @ Wx (f32, shape (B, 4H+2L)).

    h_prev/c_prev: (B, H) f32; wh: (H, 4H+2L) f32 or bf16; m_fi: (2L, 2H) f32
    block-diagonal matrix folding cumsum / reverse-cumsum / n_repeat expansion.
    Only the h @ Wh matmul is on the serial h->h critical path.
    """
    fused = xw + jnp.dot(h_prev.astype(wh.dtype), wh,
                         preferred_element_type=jnp.float32)
    gates = fused[:, :4 * H]           # (B, 4H)  [cc_i | cc_f | cc_o | cc_g]
    levels = fused[:, 4 * H:]          # (B, 2L)  [cc_i_h | cc_f_h]

    # sigmoid on [i|f|o] only, tanh on g only (half the transcendental work
    # of applying both to the full 4H block once H > 32).
    sig = jax.nn.sigmoid(gates[:, :3 * H])
    i = sig[:, 0 * H:1 * H]
    f = sig[:, 1 * H:2 * H]
    o = sig[:, 2 * H:3 * H]
    g = jnp.tanh(gates[:, 3 * H:4 * H])

    # Segmented softmax over the two L-wide halves, kept fully in f32 with an
    # exact reciprocal (approx error would compound through the recurrence).
    # Note: exp() also runs on the padded lanes >= 2L of the vreg; those lanes
    # are masked out by the logical shape and never reach the outputs.
    lane = jax.lax.broadcasted_iota(jnp.int32, levels.shape, 1)
    first = lane < L
    neg = jnp.full_like(levels, -jnp.inf)
    m_a = jnp.max(jnp.where(first, levels, neg), axis=-1, keepdims=True)
    m_b = jnp.max(jnp.where(first, neg, levels), axis=-1, keepdims=True)
    e = jnp.exp(levels - jnp.where(first, m_a, m_b))
    s_a = jnp.sum(jnp.where(first, e, 0.0), axis=-1, keepdims=True)
    s_b = jnp.sum(jnp.where(first, 0.0, e), axis=-1, keepdims=True)
    p = e * pl.reciprocal(jnp.where(first, s_a, s_b), approx=False)  # [p_i|p_f]

    # One tiny MXU push folds cumsum / reverse-cumsum / repeat: (B,2L)x(2L,2H).
    fi = jnp.dot(p, m_fi, preferred_element_type=jnp.float32)        # (B, 2H)
    i_h = fi[:, :H]
    f_h = fi[:, H:]

    w = i_h * f_h
    c_new = w * (f * c_prev + i * g) + (f_h - w) * c_prev + (i_h - w) * g
    h_new = o * jnp.tanh(c_new)
    return h_new, c_new


# ----------------------------------------------------------------------------
# Parameter preparation (done once per parameter set, never per step).
# ----------------------------------------------------------------------------
def prepare_onlstm_params(w_lstm, w_level, input_size, hidden_size,
                          level_hidden_size, mxu_dtype=jnp.bfloat16):
    """w_lstm: (4H, I+H); w_level: (2L, I+H) — PyTorch nn.Linear weights.

    Returns (wx, wh, m_fi): wx:(I, 4H+2L), wh:(H, 4H+2L) in `mxu_dtype`
    (bf16 default = v6e/v7x MXU fast path; pass jnp.float32 for exact),
    m_fi:(2L, 2H) f32 (0/1-valued, kept f32 so i_h/f_h stay exact).
    """
    I, H, L = input_size, hidden_size, level_hidden_size
    n_repeat = H // L

    w_fused = jnp.concatenate(
        [jnp.transpose(w_lstm), jnp.transpose(w_level)], axis=-1)  # (I+H, 4H+2L)
    wx = w_fused[:I].astype(mxu_dtype)
    wh = w_fused[I:].astype(mxu_dtype)

    # i_h = reverse_cumsum(p_i) repeated; f_h = cumsum(p_f) repeated.
    E = jnp.repeat(jnp.eye(L, dtype=jnp.float32), n_repeat, axis=1)   # (L, H)
    M_i = jnp.tril(jnp.ones((L, L), jnp.float32)) @ E                 # rev-cumsum
    M_f = jnp.triu(jnp.ones((L, L), jnp.float32)) @ E                 # cumsum
    Z = jnp.zeros((L, H), jnp.float32)
    m_fi = jnp.concatenate(
        [jnp.concatenate([M_i, Z], axis=-1),
         jnp.concatenate([Z, M_f], axis=-1)], axis=0)                 # (2L, 2H)
    return wx, wh, m_fi


# ----------------------------------------------------------------------------
# Single-step cell kernel (matches OnLSTMCell.forward).
# ----------------------------------------------------------------------------
def _onlstm_cell_kernel(x_ref, h_ref, c_ref, wx_ref, wh_ref, mfi_ref,
                        hc_out_ref):
    H = h_ref.shape[-1]
    L = mfi_ref.shape[0] // 2
    xw = jnp.dot(x_ref[...].astype(wx_ref.dtype), wx_ref[...],
                 preferred_element_type=jnp.float32)
    h_new, c_new = _onlstm_step_from_xw(xw, h_ref[...], c_ref[...],
                                        wh_ref[...], mfi_ref[...], H, L)
    hc_out_ref[:, :H] = h_new
    hc_out_ref[:, H:] = c_new


def onlstm_cell(x, h_prev, c_prev, params):
    """One ON-LSTM step; returns (h_new, c_new).

    Whole arrays live in VMEM for the single invocation — no grid, no
    pipelining machinery. For sequences do NOT call this in a Python loop
    over T (each call re-DMAs the weights); use onlstm_sequence instead.
    """
    wx, wh, m_fi = params
    B, _ = x.shape
    H = h_prev.shape[-1]

    hc = pl.pallas_call(
        _onlstm_cell_kernel,
        out_shape=jax.ShapeDtypeStruct((B, 2 * H), jnp.float32),
        in_specs=[
            pl.BlockSpec(memory_space=pltpu.MemorySpace.VMEM),
            pl.BlockSpec(memory_space=pltpu.MemorySpace.VMEM),
            pl.BlockSpec(memory_space=pltpu.MemorySpace.VMEM),
            pl.BlockSpec(memory_space=pltpu.MemorySpace.VMEM),
            pl.BlockSpec(memory_space=pltpu.MemorySpace.VMEM),
            pl.BlockSpec(memory_space=pltpu.MemorySpace.VMEM),
        ],
        out_specs=pl.BlockSpec(memory_space=pltpu.MemorySpace.VMEM),
    )(x, h_prev, c_prev, wx, wh, m_fi)
    return hc[:, :H], hc[:, H:]


# ----------------------------------------------------------------------------
# T-step sequence kernel: time chunked over the grid, recurrence in VMEM.
# ----------------------------------------------------------------------------
def _onlstm_seq_kernel(xw_ref, hc0_ref, wh_ref, mfi_ref, hc_seq_ref, hc_s):
    # xw_ref:     (T_CHUNK, B, 4H+2L) f32   precomputed x @ Wx for this chunk
    # hc0_ref:    (B, 2H) f32               initial [h0 | c0]
    # wh_ref:     (H, 4H+2L)                resident recurrent weight
    # mfi_ref:    (2L, 2H) f32              resident level matrix
    # hc_seq_ref: (T_CHUNK, B, 2H) f32      chunk output block
    # hc_s:       (B, 2H) f32 scratch       packed [h | c] carry across chunks
    chunk = pl.program_id(0)
    t_chunk = xw_ref.shape[0]
    H = hc_s.shape[-1] // 2
    L = mfi_ref.shape[0] // 2

    @pl.when(chunk == 0)
    def _():
        hc_s[...] = hc0_ref[...]

    wh = wh_ref[...]
    m_fi = mfi_ref[...]

    # Statically unrolled timestep loop: static slices everywhere, the carry
    # lives in the (B, 2H) scratch, and each step's packed state is copied
    # straight into row s of the chunk output block (flushed to HBM as one
    # DMA slab per chunk by the pipeline).
    for s in range(t_chunk):
        h_prev = hc_s[:, :H]
        c_prev = hc_s[:, H:]
        h_new, c_new = _onlstm_step_from_xw(xw_ref[s], h_prev, c_prev,
                                            wh, m_fi, H, L)
        hc_s[:, :H] = h_new
        hc_s[:, H:] = c_new
        hc_seq_ref[s] = hc_s[...]


def onlstm_sequence(x_seq, h0, c0, params, t_chunk=8):
    """Run T ON-LSTM steps inside one pallas_call.

    x_seq: (T, B, I); h0/c0: (B, H). Returns (h_seq, c_seq): (T, B, H) each.
    `t_chunk` timesteps run per grid iteration; T is zero-padded up to a
    multiple of t_chunk (extra steps are computed and discarded).
    """
    wx, wh, m_fi = params
    T, B, I = x_seq.shape
    H = h0.shape[-1]
    L = m_fi.shape[0] // 2
    G = wh.shape[-1]                                  # 4H + 2L

    num_chunks = pl.cdiv(T, t_chunk)
    T_pad = num_chunks * t_chunk

    # Hoisted input projection: one (T*B, I) x (I, G) matmul outside the
    # recurrence (plain XLA; gives the MXU T*B rows instead of B per step).
    xw = jnp.dot(x_seq.reshape(T * B, I).astype(wx.dtype), wx,
                 preferred_element_type=jnp.float32).reshape(T, B, G)
    if T_pad != T:
        xw = jnp.pad(xw, ((0, T_pad - T), (0, 0), (0, 0)))

    hc0 = jnp.concatenate([h0, c0], axis=-1).astype(jnp.float32)   # (B, 2H)

    hc_seq = pl.pallas_call(
        _onlstm_seq_kernel,
        out_shape=jax.ShapeDtypeStruct((T_pad, B, 2 * H), jnp.float32),
        grid=(num_chunks,),
        in_specs=[
            pl.BlockSpec((t_chunk, B, G), lambda c: (c, 0, 0)),    # xw chunk
            pl.BlockSpec((B, 2 * H), lambda c: (0, 0)),            # initial hc
            pl.BlockSpec((H, G), lambda c: (0, 0)),                # resident Wh
            pl.BlockSpec((2 * L, 2 * H), lambda c: (0, 0)),        # resident m_fi
        ],
        out_specs=pl.BlockSpec((t_chunk, B, 2 * H), lambda c: (c, 0, 0)),
        scratch_shapes=[
            pltpu.VMEM((B, 2 * H), jnp.float32),                   # [h|c] carry
        ],
        compiler_params=pltpu.CompilerParams(
            dimension_semantics=("arbitrary",)),                   # recurrence
    )(xw, hc0, wh, m_fi)

    hc_seq = hc_seq[:T]
    return hc_seq[..., :H], hc_seq[..., H:]


# ----------------------------------------------------------------------------
# Plain-JAX references mirroring the PyTorch module.
# ----------------------------------------------------------------------------
def onlstm_cell_reference(x, h_prev, c_prev, w_lstm, w_level,
                          level_hidden_size):
    H = h_prev.shape[-1]
    L = level_hidden_size
    n_repeat = H // L
    combined = jnp.concatenate([x, h_prev], axis=-1)
    gates = combined @ w_lstm.T
    levels = combined @ w_level.T
    cc_i, cc_f, cc_o, cc_g = jnp.split(gates, 4, axis=1)
    cc_i_h, cc_f_h = jnp.split(levels, 2, axis=1)
    i = jax.nn.sigmoid(cc_i)
    f = jax.nn.sigmoid(cc_f)
    o = jax.nn.sigmoid(cc_o)
    g = jnp.tanh(cc_g)
    p_f = jax.nn.softmax(cc_f_h, axis=-1)
    p_i = jax.nn.softmax(cc_i_h, axis=-1)
    f_h = jnp.cumsum(p_f, axis=-1)
    i_h = jnp.flip(jnp.cumsum(jnp.flip(p_i, axis=-1), axis=-1), axis=-1)
    i_h = jnp.repeat(i_h, n_repeat, axis=-1)
    f_h = jnp.repeat(f_h, n_repeat, axis=-1)
    w = i_h * f_h
    c_new = w * (f * c_prev + i * g) + (f_h - w) * c_prev + (i_h - w) * g
    h_new = o * jnp.tanh(c_new)
    return h_new, c_new


def onlstm_sequence_reference(x_seq, h0, c0, w_lstm, w_level,
                              level_hidden_size):
    h, c = h0, c0
    hs, cs = [], []
    for t in range(x_seq.shape[0]):
        h, c = onlstm_cell_reference(x_seq[t], h, c, w_lstm, w_level,
                                     level_hidden_size)
        hs.append(h)
        cs.append(c)
    return jnp.stack(hs), jnp.stack(cs)


# ----------------------------------------------------------------------------
if __name__ == "__main__":
    B = 8                      # multiple of 8 sublanes
    T = 16                     # two chunks -> exercises the cross-chunk carry
    T_CHUNK = 8
    input_size = 16
    hidden_size = 32
    level_hidden_size = 8

    key = jax.random.PRNGKey(0)
    kx, kxs, kh, kc, kw1, kw2 = jax.random.split(key, 6)

    x = jax.random.normal(kx, (B, input_size), jnp.float32)
    x_seq = jax.random.normal(kxs, (T, B, input_size), jnp.float32)
    h0 = jax.random.normal(kh, (B, hidden_size), jnp.float32)
    c0 = jax.random.normal(kc, (B, hidden_size), jnp.float32)

    # Deterministic PyTorch-Linear-style uniform init (bias=False).
    fan_in = input_size + hidden_size
    bound = fan_in ** -0.5
    w_lstm = jax.random.uniform(kw1, (4 * hidden_size, fan_in), jnp.float32,
                                -bound, bound)
    w_level = jax.random.uniform(kw2, (2 * level_hidden_size, fan_in),
                                 jnp.float32, -bound, bound)

    params_f32 = prepare_onlstm_params(w_lstm, w_level, input_size,
                                       hidden_size, level_hidden_size,
                                       mxu_dtype=jnp.float32)
    params_bf16 = prepare_onlstm_params(w_lstm, w_level, input_size,
                                        hidden_size, level_hidden_size,
                                        mxu_dtype=jnp.bfloat16)

    h1_ref, c1_ref = onlstm_cell_reference(x, h0, c0, w_lstm, w_level,
                                           level_hidden_size)
    h_seq_ref, c_seq_ref = onlstm_sequence_reference(
        x_seq, h0, c0, w_lstm, w_level, level_hidden_size)

    # --- f32 MXU params: tight check of kernel logic ---
    h1, c1 = onlstm_cell(x, h0, c0, params_f32)
    jax.block_until_ready((h1, c1))
    assert jnp.allclose(h1, h1_ref, atol=2e-3, rtol=2e-3)
    assert jnp.allclose(c1, c1_ref, atol=2e-3, rtol=2e-3)

    h_seq, c_seq = onlstm_sequence(x_seq, h0, c0, params_f32, t_chunk=T_CHUNK)
    jax.block_until_ready((h_seq, c_seq))
    assert jnp.allclose(h_seq, h_seq_ref, atol=1e-2, rtol=1e-2)
    assert jnp.allclose(c_seq, c_seq_ref, atol=1e-2, rtol=1e-2)

    # --- bf16 MXU-input params (v6e/v7x fast path) ---
    # bf16 rounding of the recurrent h @ Wh operands compounds over T steps;
    # accumulation / softmax / gate math stay f32, so drift stays small but
    # the tolerance is widened accordingly.
    h1b, c1b = onlstm_cell(x, h0, c0, params_bf16)
    jax.block_until_ready((h1b, c1b))
    assert jnp.allclose(h1b, h1_ref, atol=1e-2, rtol=1e-2)
    assert jnp.allclose(c1b, c1_ref, atol=1e-2, rtol=1e-2)

    h_seqb, c_seqb = onlstm_sequence(x_seq, h0, c0, params_bf16,
                                     t_chunk=T_CHUNK)
    jax.block_until_ready((h_seqb, c_seqb))
    assert jnp.allclose(h_seqb, h_seq_ref, atol=5e-2, rtol=5e-2)
    assert jnp.allclose(c_seqb, c_seq_ref, atol=5e-2, rtol=5e-2)

    print("KERNEL_OK")
</pallas_src>

<mosaic_0001>
module attributes {stable_mosaic.version = 11 : i64} {
  func.func @_onlstm_cell_kernel(%arg0: memref<8x16xf32, #tpu.memory_space<vmem>>, %arg1: memref<8x32xf32, #tpu.memory_space<vmem>>, %arg2: memref<8x32xf32, #tpu.memory_space<vmem>>, %arg3: memref<16x144xf32, #tpu.memory_space<vmem>>, %arg4: memref<32x144xf32, #tpu.memory_space<vmem>>, %arg5: memref<16x64xf32, #tpu.memory_space<vmem>>, %arg6: memref<8x64xf32, #tpu.memory_space<vmem>>) attributes {dimension_semantics = [], scalar_prefetch = 0 : i64, scratch_operands = 0 : i64, tpu.core_type = #tpu.core_type<tc>} {
    %c0 = arith.constant 0 : index
    %c0_0 = arith.constant 0 : index
    %0 = vector.load %arg0[%c0, %c0_0] : memref<8x16xf32, #tpu.memory_space<vmem>>, vector<8x16xf32>
    %c0_1 = arith.constant 0 : index
    %c0_2 = arith.constant 0 : index
    %1 = vector.load %arg3[%c0_1, %c0_2] : memref<16x144xf32, #tpu.memory_space<vmem>>, vector<16x144xf32>
    %cst = arith.constant dense<0.000000e+00> : vector<8x144xf32>
    %2 = tpu.matmul %0, %1, %cst {dimension_numbers = #tpu.dot_dimension_numbers<[1], [0], [0], [1], [0, 0, 1, 1], [], []>} : vector<8x16xf32>, vector<16x144xf32>, vector<8x144xf32> -> vector<8x144xf32>
    %c0_3 = arith.constant 0 : index
    %c0_4 = arith.constant 0 : index
    %3 = vector.load %arg1[%c0_3, %c0_4] : memref<8x32xf32, #tpu.memory_space<vmem>>, vector<8x32xf32>
    %c0_5 = arith.constant 0 : index
    %c0_6 = arith.constant 0 : index
    %4 = vector.load %arg2[%c0_5, %c0_6] : memref<8x32xf32, #tpu.memory_space<vmem>>, vector<8x32xf32>
    %c0_7 = arith.constant 0 : index
    %c0_8 = arith.constant 0 : index
    %5 = vector.load %arg4[%c0_7, %c0_8] : memref<32x144xf32, #tpu.memory_space<vmem>>, vector<32x144xf32>
    %c0_9 = arith.constant 0 : index
    %c0_10 = arith.constant 0 : index
    %6 = vector.load %arg5[%c0_9, %c0_10] : memref<16x64xf32, #tpu.memory_space<vmem>>, vector<16x64xf32>
    %cst_11 = arith.constant dense<0.000000e+00> : vector<8x144xf32>
    %7 = tpu.matmul %3, %5, %cst_11 {dimension_numbers = #tpu.dot_dimension_numbers<[1], [0], [0], [1], [0, 0, 1, 1], [], []>} : vector<8x32xf32>, vector<32x144xf32>, vector<8x144xf32> -> vector<8x144xf32>
    %8 = arith.addf %2, %7 : vector<8x144xf32>
    %9 = vector.extract_strided_slice %8 {offsets = [0, 0], sizes = [8, 128], strides = [1, 1]} : vector<8x144xf32> to vector<8x128xf32>
    %10 = vector.extract_strided_slice %8 {offsets = [0, 128], sizes = [8, 16], strides = [1, 1]} : vector<8x144xf32> to vector<8x16xf32>
    %11 = vector.extract_strided_slice %9 {offsets = [0, 0], sizes = [8, 96], strides = [1, 1]} : vector<8x128xf32> to vector<8x96xf32>
    %12 = arith.negf %11 : vector<8x96xf32>
    %13 = math.exp %12 : vector<8x96xf32>
    %cst_12 = arith.constant 1.000000e+00 : f32
    %14 = vector.broadcast %cst_12 : f32 to vector<8x96xf32>
    %15 = arith.addf %14, %13 : vector<8x96xf32>
    %16 = arith.divf %14, %15 : vector<8x96xf32>
    %17 = vector.extract_strided_slice %16 {offsets = [0, 0], sizes = [8, 32], strides = [1, 1]} : vector<8x96xf32> to vector<8x32xf32>
    %18 = vector.extract_strided_slice %16 {offsets = [0, 32], sizes = [8, 32], strides = [1, 1]} : vector<8x96xf32> to vector<8x32xf32>
    %19 = vector.extract_strided_slice %16 {offsets = [0, 64], sizes = [8, 32], strides = [1, 1]} : vector<8x96xf32> to vector<8x32xf32>
    %20 = vector.extract_strided_slice %9 {offsets = [0, 96], sizes = [8, 32], strides = [1, 1]} : vector<8x128xf32> to vector<8x32xf32>
    %21 = math.tanh %20 : vector<8x32xf32>
    %22 = tpu.iota {dimensions = array<i32: 1>} : vector<8x16xi32>
    %c8_i32 = arith.constant 8 : i32
    %23 = vector.broadcast %c8_i32 : i32 to vector<8x16xi32>
    %24 = arith.cmpi slt, %22, %23 : vector<8x16xi32>
    %cst_13 = arith.constant 0xFF800000 : f32
    %25 = vector.broadcast %cst_13 : f32 to vector<8x16xf32>
    %26 = arith.select %24, %10, %25 : vector<8x16xi1>, vector<8x16xf32>
    %cst_14 = arith.constant dense<0xFF800000> : vector<8xf32>
    %27 = vector.multi_reduction <maximumf>, %26, %cst_14 [1] : vector<8x16xf32> to vector<8xf32>
    %28 = vector.shape_cast %27 : vector<8xf32> to vector<8x1xf32>
    %29 = arith.select %24, %25, %10 : vector<8x16xi1>, vector<8x16xf32>
    %cst_15 = arith.constant dense<0xFF800000> : vector<8xf32>
    %30 = vector.multi_reduction <maximumf>, %29, %cst_15 [1] : vector<8x16xf32> to vector<8xf32>
    %31 = vector.shape_cast %30 : vector<8xf32> to vector<8x1xf32>
    %32 = vector.shape_cast %28 : vector<8x1xf32> to vector<8x1xf32>
    %33 = vector.broadcast %32 : vector<8x1xf32> to vector<8x16xf32>
    %34 = vector.shape_cast %31 : vector<8x1xf32> to vector<8x1xf32>
    %35 = vector.broadcast %34 : vector<8x1xf32> to vector<8x16xf32>
    %36 = arith.select %24, %33, %35 : vector<8x16xi1>, vector<8x16xf32>
    %37 = arith.subf %10, %36 : vector<8x16xf32>
    %38 = math.exp %37 : vector<8x16xf32>
    %cst_16 = arith.constant 0.000000e+00 : f32
    %39 = vector.broadcast %cst_16 : f32 to vector<8x16xf32>
    %40 = arith.select %24, %38, %39 : vector<8x16xi1>, vector<8x16xf32>
    %cst_17 = arith.constant dense<0.000000e+00> : vector<8xf32>
    %41 = vector.multi_reduction <add>, %40, %cst_17 [1] : vector<8x16xf32> to vector<8xf32>
    %42 = vector.shape_cast %41 : vector<8xf32> to vector<8x1xf32>
    %cst_18 = arith.constant 0.000000e+00 : f32
    %43 = vector.broadcast %cst_18 : f32 to vector<8x16xf32>
    %44 = arith.select %24, %43, %38 : vector<8x16xi1>, vector<8x16xf32>
    %cst_19 = arith.constant dense<0.000000e+00> : vector<8xf32>
    %45 = vector.multi_reduction <add>, %44, %cst_19 [1] : vector<8x16xf32> to vector<8xf32>
    %46 = vector.shape_cast %45 : vector<8xf32> to vector<8x1xf32>
    %47 = vector.shape_cast %42 : vector<8x1xf32> to vector<8x1xf32>
    %48 = vector.broadcast %47 : vector<8x1xf32> to vector<8x16xf32>
    %49 = vector.shape_cast %46 : vector<8x1xf32> to vector<8x1xf32>
    %50 = vector.broadcast %49 : vector<8x1xf32> to vector<8x16xf32>
    %51 = arith.select %24, %48, %50 : vector<8x16xi1>, vector<8x16xf32>
    %52 = tpu.reciprocal %51 : vector<8x16xf32> -> vector<8x16xf32>
    %53 = arith.mulf %38, %52 : vector<8x16xf32>
    %cst_20 = arith.constant dense<0.000000e+00> : vector<8x64xf32>
    %54 = tpu.matmul %53, %6, %cst_20 {dimension_numbers = #tpu.dot_dimension_numbers<[1], [0], [0], [1], [0, 0, 1, 1], [], []>} : vector<8x16xf32>, vector<16x64xf32>, vector<8x64xf32> -> vector<8x64xf32>
    %55 = vector.extract_strided_slice %54 {offsets = [0, 0], sizes = [8, 32], strides = [1, 1]} : vector<8x64xf32> to vector<8x32xf32>
    %56 = vector.extract_strided_slice %54 {offsets = [0, 32], sizes = [8, 32], strides = [1, 1]} : vector<8x64xf32> to vector<8x32xf32>
    %57 = arith.mulf %55, %56 : vector<8x32xf32>
    %58 = arith.mulf %18, %4 : vector<8x32xf32>
    %59 = arith.mulf %17, %21 : vector<8x32xf32>
    %60 = arith.addf %58, %59 : vector<8x32xf32>
    %61 = arith.mulf %57, %60 : vector<8x32xf32>
    %62 = arith.subf %56, %57 : vector<8x32xf32>
    %63 = arith.mulf %62, %4 : vector<8x32xf32>
    %64 = arith.addf %61, %63 : vector<8x32xf32>
    %65 = arith.subf %55, %57 : vector<8x32xf32>
    %66 = arith.mulf %65, %21 : vector<8x32xf32>
    %67 = arith.addf %64, %66 : vector<8x32xf32>
    %68 = math.tanh %67 : vector<8x32xf32>
    %69 = arith.mulf %19, %68 : vector<8x32xf32>
    %c0_21 = arith.constant 0 : index
    %c0_22 = arith.constant 0 : index
    %70 = vector.load %arg6[%c0_21, %c0_22] : memref<8x64xf32, #tpu.memory_space<vmem>>, vector<8x32xf32>
    tpu.vector_store %arg6[%c0_21, %c0_22], %69 {strides = array<i32>} : memref<8x64xf32, #tpu.memory_space<vmem>>, vector<8x32xf32>,
    %c0_23 = arith.constant 0 : index
    %c32 = arith.constant 32 : index
    %71 = vector.load %arg6[%c0_23, %c32] : memref<8x64xf32, #tpu.memory_space<vmem>>, vector<8x32xf32>
    tpu.vector_store %arg6[%c0_23, %c32], %67 {strides = array<i32>} : memref<8x64xf32, #tpu.memory_space<vmem>>, vector<8x32xf32>,
    return
  }
}

</mosaic_0001>

<bundles_post_ra>
// kernel: tpu_custom_call.1
= control target key start
LH: loop header
LB: loop body
LE: loop exit
PB: predicated region body
PF: predicated region fallthrough
CT: control target
= control target key end

     0   :  { %11 = vsyncpa [#allocation3], 0  ;;  %s791_s0 = inlined_call_operand.hbm [shape: f32[8,16], index: 0, kind: input, shape index: {}]   ;;  %s792_s1 = inlined_call_operand.hbm [shape: f32[8,32], index: 1, kind: input, shape index: {}]   ;;  %s793_s2 = inlined_call_operand.hbm [shape: f32[8,32], index: 2, kind: input, shape index: {}]   ;;  %s794_s3 = inlined_call_operand.hbm [shape: f32[16,144], index: 3, kind: input, shape index: {}]   ;;  %s795_s4 = inlined_call_operand.hbm [shape: f32[32,144], index: 4, kind: input, shape index: {}]   ;;  %s796_s5 = inlined_call_operand.vmem [shape: f32[16,64], index: 5, kind: input, shape index: {}]   ;;  %s797_s6 = inlined_call_operand.hbm [shape: f32[8,64], index: 6, kind: output, shape index: {}]  }
   0x1   :  { %12 = vsyncpa [#allocation6], 0 }
   0x2   :  { %13 = vsyncpa [#allocation9], 0 }
   0x3   :  { %14 = vsyncpa [#allocation4], 0  ;;  %s629_s21 = smov [#allocation5]   ;;  %s630_s23 = smov [#allocation8]  }
   0x4   :  { %s31_s22 = sshll.u32 %s629_s21, 4  ;;  %s50_s24 = sshll.u32 %s630_s23, 4  ;;  %s32_s22 = int_to_ptr.vmem [resolvable:$true] %s31_s22  ;;  %s678_s24 = int_to_ptr.vmem [resolvable:$true] %s50_s24 }
   0x5   :  { %s489_s27 = scalar_lea.hbm %s792_s1, 128 }
   0x6   :  { %p490_p0 = scmp.ne.s32.totalorder %s792_s1, %s489_s27  ;;  %p493_p1 = scmp.lt.u32.totalorder %s489_s27, %s792_s1 }
   0x8   :  { %p495_p2 = pnand %p493_p1, %p490_p0 }
   0xa   :  { %498 = shalt.err (!%p495_p2)
}
   0xb   :  { %s499_s8 = scalar_lea.vmem %s32_s22, 128  ;;  %p504_p4 = scmp.lt.s32.totalorder %s32_s22, %s32_s22 }
   0xc   :  { %p500_p3 = scmp.ne.s32.totalorder %s32_s22, %s499_s8  ;;  %p505_p5 = scmp.lt.s32.totalorder %s499_s8, %s499_s8 }
   0xe   :  { %p506_p6 = por %p505_p5, %p504_p4 }
  0x10   :  { %p507_p7 = pnand %p506_p6, %p500_p3 }
  0x12   :  { %510 = shalt.err (!%p507_p7)
}
  0x13   :  { %34 = dma.hbm_to_vmem [thread:$0]  %s792_s1, 128, %s32_s22, [#allocation6]  }
  0x14   :  { %s511_s13 = scalar_lea.hbm %s794_s3, 512 }
  0x15   :  { %p512_p8 = scmp.ne.s32.totalorder %s794_s3, %s511_s13  ;;  %p515_p9 = scmp.lt.u32.totalorder %s511_s13, %s794_s3 }
  0x17   :  { %p517_p10 = pnand %p515_p9, %p512_p8 }
  0x19   :  { %520 = shalt.err (!%p517_p10)
}
  0x1a   :  { %s521_s18 = scalar_lea.vmem %s678_s24, 512  ;;  %p526_p12 = scmp.lt.s32.totalorder %s678_s24, %s678_s24 }
  0x1b   :  { %p522_p11 = scmp.ne.s32.totalorder %s678_s24, %s521_s18  ;;  %p527_p13 = scmp.lt.s32.totalorder %s521_s18, %s521_s18 }
  0x1d   :  { %p528_p0 = por %p527_p13, %p526_p12 }
  0x1f   :  { %p529_p1 = pnand %p528_p0, %p522_p11 }
  0x21   :  { %532 = shalt.err (!%p529_p1)
}
  0x22   :  { %s631_s1 = smov 256   ;;  %s632_s19 = smov 16  }
  0x23   :  { %56 = dma.hbm_to_vmem [thread:$0]  %s794_s3, 512, %s678_s24, [#allocation9], %s631_s1, %s631_s1, %s632_s19  }
  0x24   :  { %s633_s22 = smov [#allocation2]   ;;  %s634_s25 = smov [#allocation7]  }
  0x25   :  { %s21_s23 = sshll.u32 %s633_s22, 4  ;;  %s41_s26 = sshll.u32 %s634_s25, 4  ;;  %s22_s23 = int_to_ptr.vmem [resolvable:$true] %s21_s23  ;;  %s42_s26 = int_to_ptr.vmem [resolvable:$true] %s41_s26 }
  0x26   :  { %s533_s29 = scalar_lea.hbm %s791_s0, 128 }
  0x27   :  { %p534_p2 = scmp.ne.s32.totalorder %s791_s0, %s533_s29  ;;  %p537_p3 = scmp.lt.u32.totalorder %s533_s29, %s791_s0 }
  0x29   :  { %p539_p4 = pnand %p537_p3, %p534_p2 }
  0x2b   :  { %542 = shalt.err (!%p539_p4)
}
  0x2c   :  { %s543_s3 = scalar_lea.vmem %s22_s23, 128  ;;  %p548_p6 = scmp.lt.s32.totalorder %s22_s23, %s22_s23 }
  0x2d   :  { %p544_p5 = scmp.ne.s32.totalorder %s22_s23, %s543_s3  ;;  %p549_p7 = scmp.lt.s32.totalorder %s543_s3, %s543_s3 }
  0x2f   :  { %p550_p8 = por %p549_p7, %p548_p6 }
  0x31   :  { %p551_p9 = pnand %p550_p8, %p544_p5 }
  0x33   :  { %554 = shalt.err (!%p551_p9)
}
  0x34   :  { %24 = dma.hbm_to_vmem [thread:$0]  %s791_s0, 128, %s22_s23, [#allocation3]  }
  0x35   :  { %s555_s13 = scalar_lea.hbm %s793_s2, 128 }
  0x36   :  { %p556_p10 = scmp.ne.s32.totalorder %s793_s2, %s555_s13  ;;  %p559_p11 = scmp.lt.u32.totalorder %s555_s13, %s793_s2 }
  0x38   :  { %p561_p12 = pnand %p559_p11, %p556_p10 }
  0x3a   :  { %564 = shalt.err (!%p561_p12)
}
  0x3b   :  { %s565_s18 = scalar_lea.vmem %s42_s26, 128  ;;  %p570_p0 = scmp.lt.s32.totalorder %s42_s26, %s42_s26 }
  0x3c   :  { %p566_p13 = scmp.ne.s32.totalorder %s42_s26, %s565_s18  ;;  %p571_p1 = scmp.lt.s32.totalorder %s565_s18, %s565_s18 }
  0x3e   :  { %p572_p2 = por %p571_p1, %p570_p0 }
  0x40   :  { %p573_p3 = pnand %p572_p2, %p566_p13 }
  0x42   :  { %576 = shalt.err (!%p573_p3)
}
  0x43   :  { %44 = dma.hbm_to_vmem [thread:$0]  %s793_s2, 128, %s42_s26, [#allocation6]  }
  0x44   :  { %s635_s21 = smov [#allocation10]   ;;  %s577_s27 = scalar_lea.hbm %s795_s4, 1024 }
  0x45   :  { %s62_s22 = sshll.u32 %s635_s21, 4  ;;  %p578_p4 = scmp.ne.s32.totalorder %s795_s4, %s577_s27  ;;  %s63_s22 = int_to_ptr.vmem [resolvable:$true] %s62_s22 }
  0x46   :  { %p581_p5 = scmp.lt.u32.totalorder %s577_s27, %s795_s4 }
  0x48   :  { %p583_p6 = pnand %p581_p5, %p578_p4 }
  0x4a   :  { %586 = shalt.err (!%p583_p6)
}
  0x4b   :  { %s587_s8 = scalar_lea.vmem %s63_s22, 1024  ;;  %p592_p8 = scmp.lt.s32.totalorder %s63_s22, %s63_s22 }
  0x4c   :  { %p588_p7 = scmp.ne.s32.totalorder %s63_s22, %s587_s8  ;;  %p593_p9 = scmp.lt.s32.totalorder %s587_s8, %s587_s8 }
  0x4e   :  { %p594_p10 = por %p593_p9, %p592_p8 }
  0x50   :  { %p595_p11 = pnand %p594_p10, %p588_p7 }
  0x52   :  { %598 = shalt.err (!%p595_p11)
}
  0x53   :  { %68 = dma.hbm_to_vmem [thread:$0]  %s795_s4, 1024, %s63_s22, [#allocation9], %s631_s1, %s631_s1, %s632_s19  }
  0x54   :  { %621 = dma.done.wait [#allocation3], 128  }
  0x55   :  { %622 = vsyncadd [#allocation3], 4294967168 }
  0x56   :  { %623 = dma.done.wait [#allocation6], 256  }
  0x57   :  { %624 = vsyncadd [#allocation6], 4294967040 }
  0x58   :  { %625 = dma.done.wait [#allocation9], 1536  }
  0x59   :  { %626 = vsyncadd [#allocation9], 4294965760  ;;  %v636_v0 = vmov 0.0   ;;  %v94_v1 = vld [vmem:[#allocation10 + $0x8] sm:$0xff]  ;;  %v96_v2 = vld [vmem:[#allocation10 + $0x18] sm:$0xff]  ;;  %vm178_vm0 = vcmask 130048   ;;  %v260_v21 = vlaneseq }
  0x5a   :  { %246 = vmatprep.mubr.f32.mxu1 %v636_v0  ;;  %171 = vmatprep.mubr.f32.mxu0 %v636_v0  ;;  %v93_v3 = vld [vmem:[#allocation10] sm:$0xff]  ;;  %v446_v4 = vpack.c.bf16 %v96_v2, %v94_v1  ;;  %v95_v5 = vld [vmem:[#allocation10 + $0x10] sm:$0xff]  ;;  %v88_v6 = vld [vmem:[#allocation8 + $0x8] sm:$0xff]  ;;  %vm103_vm1 = vcmask 261120   ;;  %s637_s4 = smov 32   ;;  %v638_v47 = vmov 0.0|0.0  }
  0x5b   :  { %v90_v7 = vld [vmem:[#allocation8 + $0x18] sm:$0xff]  ;;  %v448_v8 = vpack.c.bf16 %v95_v5, %v93_v3  ;;  %v98_v10 = vld [vmem:[#allocation10 + $0x28] sm:$0xff]  ;;  %v87_v12 = vld [vmem:[#allocation8] sm:$0xff]  ;;  %v261_v22 = vand.u32 127, %v260_v21  ;;  %vm639_vm3 = vmmov 0   ;;  %s641_s24 = smov 64  }
  0x5c   :  { %v454_v9 = vpack.c.bf16 %v90_v7, %v88_v6  ;;  %v100_v11 = vld [vmem:[#allocation10 + $0x38] sm:$0xff]  ;;  %447 = vmatprep.subr.bf16.mxu0 %v446_v4  ;;  %v89_v14 = vld [vmem:[#allocation8 + $0x10] sm:$0xff]  ;;  %v97_v15 = vld [vmem:[#allocation10 + $0x20] sm:$0xff]  ;;  %s642_s10 = smov [#allocation11]   ;;  %vm413_vm4 = vcmask 523520  }
  0x5d   :  { %v450_v13 = vpack.c.bf16 %v100_v11, %v98_v10  ;;  %v99_v16 = vld [vmem:[#allocation10 + $0x30] sm:$0xff]  ;;  %449 = vmatpush1.bf16.msra.mxu0 %v448_v8  ;;  %v456_v17 = vpack.c.bf16 %v89_v14, %v87_v12  ;;  %v86_v19 = vld [vmem:[#allocation2] sm:$0xff]  ;;  %vm262_vm2 = vcmp.lt.s32.totalorder %v261_v22, 8  ;;  %v92_v44 = vld [vmem:[#allocation7] sm:$0xff]  ;;  %s421_s11 = sshll.u32 %s642_s10, 4  ;;  %s422_s11 = int_to_ptr.vmem [resolvable:$true] %s421_s11 }
  0x5e   :  { %455 = vmatprep.subr.bf16.mxu1 %v454_v9  ;;  %v452_v18 = vpack.c.bf16 %v99_v16, %v97_v15  ;;  %v91_v20 = vld [vmem:[#allocation5] sm:$0xff]  ;;  %v101_v45 = vld [vmem:[%s796_s5] sm:$0xff]  ;;  %v102_v46 = vld [vmem:[%s796_s5 + $0x8] sm:$0xff]  ;;  %s640_s5 = smov 96   ;;  %s599_s12 = scalar_lea.vmem %s422_s11, 128 }
  0x5f   :  { %451 = vmatprep.subr.bf16.mxu0 %v450_v13  ;;  %457 = vmatpush1.bf16.msra.mxu1 %v456_v17  ;;  %v459_v48 = vpack.c.bf16 %v102_v46, %v101_v45  ;;  %p600_p12 = scmp.ne.s32.totalorder %s422_s11, %s599_s12  ;;  %p604_p13 = scmp.lt.s32.totalorder %s422_s11, %s422_s11 }
  0x60   :  { %458 = vmatprep.subr.bf16.mxu1 %v638_v47  ;;  %p605_p0 = scmp.lt.s32.totalorder %s599_s12, %s599_s12 }
  0x61   :  { %453 = vmatpush1.bf16.msra.mxu0 %v452_v18 }
  0x62   :  { %433 = vmatmul.mubr.msk.f32.vlgmr.msra.gmra.mrb[0].mxu1 %vm178_vm0, %v86_v19  ;;  %p606_p1 = por %p605_p0, %p604_p13 }
  0x63   :  { %443 = vmatprep.mubr.msk.f32.mxu1 %vm639_vm3, %v636_v0  ;;  %460 = vmatpush3.bf16.msra.mxu1 %v459_v48 }
  0x64   :  { %432 = vmatmul.mubr.msk.f32.vlgmr.msra.gmra.mrb[0].mxu0 %vm103_vm1, %v91_v20  ;;  %p607_p2 = pnand %p606_p1, %p600_p12 }
 0x135   :  { %v248_v23 = vpop.f32.mrb[0].mxu1 }
 0x136   :  { %v250_v24 = vpop.f32.mrb[1].mxu1 }
 0x137   :  { %v173_v25 = vpop.f32.mrb[0].mxu0 }
 0x138   :  { %v249_v26 = vadd.f32 %v248_v23, %v173_v25  ;;  %v175_v27 = vpop.f32.mrb[1].mxu0 }
 0x139   :  { %v251_v28 = vadd.f32 %v250_v24, %v175_v27 }
 0x13a   :  { %v434_v49 = vmul.f32 -1.442695, %v249_v26 }
 0x13b   :  { %v263_v29 = vsel %vm262_vm2, %v251_v28, -inf  ;;  %v267_v31 = vsel %vm262_vm2, -inf, %v251_v28 }
 0x13c   :  { %v264_v30 = vsel %vm178_vm0, %v263_v29, -inf  ;;  %v268_v32 = vsel %vm178_vm0, %v267_v31, -inf }
 0x13d   :  { %265 = vmax.xlane.f32.xlu0 %v264_v30 }
 0x141   :  { %269 = vmax.xlane.f32.xlu0 %v268_v32 }
 0x1ca   :  { %v266_v33 = vpop.xlane.xlu0 %265 }
 0x1ce   :  { %v270_v34 = vpop.xlane.xlu0 %269 }
 0x1cf   :  { %v271_v35 = vsel %vm262_vm2, %v266_v33, %v270_v34 }
 0x1d0   :  { %v272_v36 = vsub.f32 %v251_v28, %v271_v35 }
 0x1d2   :  { %v273_v37 = vmul.f32 1.442695, %v272_v36 }
 0x1d4   :  { %477 = vpow2.f32 %v273_v37 }
 0x1d5   :  { %479 = vtanh.f32 %v249_v26 }
 0x1d6   :  { %481 = vpow2.f32 %v434_v49 }
 0x1de   :  { %v478_v38 = vpop.eup %477 }
 0x1df   :  { %v275_v39 = vsel %vm262_vm2, %v478_v38, 0.0  ;;  %v279_v41 = vsel %vm262_vm2, 0.0, %v478_v38  ;;  %v480_v43 = vpop.eup %479 }
 0x1e0   :  { %v276_v40 = vsel %vm178_vm0, %v275_v39, 0.0  ;;  %v280_v42 = vsel %vm178_vm0, %v279_v41, 0.0  ;;  %v482_v50 = vpop.eup %481 }
 0x1e1   :  { %277 = vadd.xlane.f32.xlu1 %v276_v40  ;;  %v256_v51 = vadd.f32 1.0, %v482_v50 }
 0x1e3   :  { %483 = vrcp.f32 %v256_v51 }
 0x1e5   :  { %281 = vadd.xlane.f32.xlu1 %v280_v42 }
 0x1ed   :  { %v484_v55 = vpop.eup %483 }
 0x1f6   :  { %370 = vrot.lane.b32.xlu1 %v480_v43, %s637_s4 }
 0x1fa   :  { %365 = vrot.lane.b32.xlu1 %v92_v44, %s637_s4 }
 0x26e   :  { %v278_v52 = vpop.xlane.xlu1 %277 }
 0x272   :  { %v282_v53 = vpop.xlane.xlu1 %281 }
 0x273   :  { %v283_v54 = vsel %vm262_vm2, %v278_v52, %v282_v53 }
 0x274   :  { %485 = vrcp.f32 %v283_v54 }
 0x276   :  { %v371_v56 = vpop.permute.xlu1 %370 }
 0x277   :  { %v373_v57 = vmul.f32 %v484_v55, %v371_v56 }
 0x279   :  { %375 = vrot.lane.b32.xlu1 %v373_v57, %s637_s4 }
 0x27a   :  { %v366_v60 = vpop.permute.xlu1 %365 }
 0x27b   :  { %v368_v61 = vmul.f32 %v484_v55, %v366_v60 }
 0x27e   :  { %v486_v58 = vpop.eup %485 }
 0x27f   :  { %v285_v59 = vmul.f32 %v486_v58, %v478_v38 }
 0x281   :  { %444 = vmatmul.mubr.msk.f32.vlgmr.msra.gmra.mrb[2].mxu1 %vm178_vm0, %v285_v59 }
 0x2eb   :  { %v376_v62 = vpop.permute.xlu1 %375 }
 0x2ec   :  { %v378_v63 = vadd.f32 %v376_v62, %v368_v61 }
 0x2ee   :  { %380 = vrot.lane.b32.xlu1 %v378_v63, %s640_s5 }
 0x354   :  { %v355_v0 = vpop.f32.mrb[2].mxu1 }
 0x355   :  { %360 = vrot.lane.b32.xlu0 %v355_v0, %s640_s5  ;;  %v445_v1 = vpop.f32.mrb[3].mxu1 }
 0x360   :  { %v381_v8 = vpop.permute.xlu1 %380 }
 0x3c7   :  { %v361_v2 = vpop.permute.xlu0 %360 }
 0x3c8   :  { %v363_v3 = vmul.f32 %v361_v2, %v355_v0 }
 0x3ca   :  { %v395_v4 = vsub.f32 %v355_v0, %v363_v3  ;;  %385 = vrot.lane.b32.xlu0 %v363_v3, %s637_s4  ;;  %v383_v9 = vmul.f32 %v381_v8, %v363_v3 }
 0x3cc   :  { %v396_v11 = vmul.f32 %v395_v4, %v371_v56 }
 0x43c   :  { %v386_v5 = vpop.permute.xlu0 %385 }
 0x43d   :  { %v388_v6 = vsub.f32 %v355_v0, %v386_v5 }
 0x43f   :  { %v389_v7 = vmul.f32 %v388_v6, %v366_v60 }
 0x441   :  { %391 = vrot.lane.b32.xlu0 %v389_v7, %s640_s5 }
 0x4b3   :  { %v392_v10 = vpop.permute.xlu0 %391 }
 0x4b4   :  { %v394_v12 = vadd.f32 %v392_v10, %v383_v9 }
 0x4b6   :  { %v397_v13 = vadd.f32 %v396_v11, %v394_v12 }
 0x4b8   :  { %487 = vtanh.f32 %v397_v13 }
 0x4c2   :  { %v488_v14 = vpop.eup %487 }
 0x4c3   :  { %400 = vrot.lane.b32.xlu1 %v488_v14, %s641_s24 }
 0x4c7   :  { %410 = vrot.lane.b32.xlu1 %v397_v13, %s637_s4 }
 0x535   :  { %v401_v15 = vpop.permute.xlu1 %400 }
 0x536   :  { %v403_v16 = vmul.f32 %v484_v55, %v401_v15 }
 0x538   :  { %405 = vrot.lane.b32.xlu0 %v403_v16, %s641_s24 }
 0x539   :  { %v411_v18 = vpop.permute.xlu1 %410 }
 0x5aa   :  { %v406_v17 = vpop.permute.xlu0 %405 }
 0x5ab   :  { %408 = vst.msk [vmem:[#allocation11] sm:$0xff] %vm103_vm1, %v406_v17 }
 0x5ac   :  { %414 = vst.msk [vmem:[#allocation11] sm:$0xff] %vm413_vm4, %v411_v18 }
 0x5ad   :  { %610 = shalt.err (!%p607_p2)
}
 0x5ae   :  { %s611_s15 = scalar_lea.hbm %s797_s6, 128 }
 0x5af   :  { %p612_p3 = scmp.ne.s32.totalorder %s797_s6, %s611_s15  ;;  %p615_p4 = scmp.lt.u32.totalorder %s611_s15, %s797_s6 }
 0x5b1   :  { %p617_p5 = pnand %p615_p4, %p612_p3 }
 0x5b3   :  { %620 = shalt.err (!%p617_p5)
}
 0x5b4   :  { %424 = dma.vmem_to_hbm [thread:$0]  %s422_s11, 128, %s797_s6, [#allocation4]  }
 0x5b5   :  { %627 = dma.done.wait [#allocation4], 128  }
 0x5b6   :  { %628 = vsyncadd [#allocation4], 4294967168 }
 0x5b7   :  { %428 = vsyncpa [#allocation3], 1 }
 0x5b8   :  { %429 = vsyncpa [#allocation6], 1 }
 0x5b9   :  { %430 = vsyncpa [#allocation9], 1 }
 0x5ba   :  { %431 = vsyncpa [#allocation4], 1 }

</bundles_post_ra>
